<compile_context>
chip_gen: v6e
topology: v6e:2x2x1
jax: 0.10.0
libtpu: 0.0.40
codegen_flags: <defaults>
</compile_context>

<pallas_src>
import functools
import math

import jax
import jax.numpy as jnp
from jax import lax
from jax.experimental import pallas as pl
from jax.experimental.pallas import tpu as pltpu


def _attn_kernel(q_ref, k_ref, v_ref, o_ref, *, scale, causal, H, E, D):
    # q_ref: (1, L, H*E), k_ref: (1, S, H*E), v_ref: (1, S, H*D)
    # o_ref: (1, L, H*D)   (lane-dense; head h occupies columns [h*D, (h+1)*D))
    L = q_ref.shape[1]
    S = k_ref.shape[1]

    # Hoisted loads: one big lane-dense load per operand per grid step.
    q_all = q_ref[0] * scale          # (L, H*E); scale folded once (scale > 0)
    k_all = k_ref[0]                  # (S, H*E)
    v_all = v_ref[0]                  # (S, H*D)

    if causal:
        # torch.triu(ones(L, S), diagonal=1) -> True strictly above the diagonal.
        row = lax.broadcasted_iota(jnp.int32, (L, S), 0)
        col = lax.broadcasted_iota(jnp.int32, (L, S), 1)
        causal_mask = col > row       # built once, shared by all heads

    outs = []
    for h in range(H):                # H is static -> unrolled; one grid step per batch
        q = q_all[:, h * E:(h + 1) * E]   # (L, E) static lane slice
        k = k_all[:, h * E:(h + 1) * E]   # (S, E)
        v = v_all[:, h * D:(h + 1) * D]   # (S, D)

        # scores[l, s] = scale * sum_e q[l, e] * k[s, e]
        scores = lax.dot_general(
            q, k, (((1,), (1,)), ((), ())),
            preferred_element_type=jnp.float32)            # (L, S) f32

        if causal:
            scores = jnp.where(causal_mask, -jnp.inf, scores)

        # Numerically-stable softmax, normalization deferred past the PV matmul.
        m = jnp.max(scores, axis=-1, keepdims=True)
        p = jnp.exp(scores - m)                            # un-normalized probs
        denom = jnp.sum(p, axis=-1, keepdims=True)         # (L, 1)
        # NOTE: a fully-masked row gives denom == 0 -> NaN, matching the PyTorch
        # reference (softmax over all -inf); cannot happen for causal L == S.

        out = jnp.dot(p.astype(v.dtype), v,
                      preferred_element_type=jnp.float32)  # (L, D) f32
        out = out * pl.reciprocal(denom)                   # deferred 1/denom
        outs.append(out)

    # Single lane-dense store of the whole (L, H*D) slab (unmasked vst).
    o_ref[0] = jnp.concatenate(outs, axis=-1).astype(o_ref.dtype)
    # TODO(synk): attention dropout (p=0.1) is a no-op in eval mode; not applied here.


def full_attention(queries, keys, values, *, scale=None, mask_flag=True):
    """queries (B,L,H,E), keys (B,S,H,E), values (B,S,H,D) -> (V (B,L,H,D), None)."""
    B, L, H, E = queries.shape
    _, S, _, D = values.shape
    # NOTE: scale is folded into q before the -inf mask; equivalent to the
    # reference for scale > 0 (always true for the default 1/sqrt(E)).
    scale = float(scale) if scale is not None else 1.0 / math.sqrt(E)

    # Free contiguous reshapes (no transpose): merge (H, E)/(H, D) into the lane
    # axis so per-head slices inside the kernel are lane-range slices.
    q2 = queries.reshape(B, L, H * E)
    k2 = keys.reshape(B, S, H * E)
    v2 = values.reshape(B, S, H * D)

    kernel = functools.partial(
        _attn_kernel, scale=scale, causal=mask_flag, H=H, E=E, D=D)

    out_flat = pl.pallas_call(
        kernel,
        out_shape=jax.ShapeDtypeStruct((B, L, H * D), queries.dtype),
        grid_spec=pltpu.PrefetchScalarGridSpec(
            num_scalar_prefetch=0,
            grid=(B,),
            in_specs=[
                pl.BlockSpec((1, L, H * E), lambda b: (b, 0, 0)),
                pl.BlockSpec((1, S, H * E), lambda b: (b, 0, 0)),
                pl.BlockSpec((1, S, H * D), lambda b: (b, 0, 0)),
            ],
            out_specs=pl.BlockSpec((1, L, H * D), lambda b: (b, 0, 0)),
        ),
        compiler_params=pltpu.CompilerParams(
            dimension_semantics=("parallel",)),
    )(q2, k2, v2)

    # Free contiguous reshape back to the PyTorch output layout (B, L, H, D).
    # TODO(synk): for long sequences add a KV grid axis with flash-style online
    # softmax so the (L, S) score tile never exceeds VMEM; PatchTST patch counts
    # are small so the full-S tile is used here.
    return out_flat.reshape(B, L, H, D), None


def _reference(queries, keys, values, scale=None, mask_flag=True):
    B, L, H, E = queries.shape
    scale = scale if scale is not None else 1.0 / math.sqrt(E)
    scores = jnp.einsum('blhe,bshe->bhls', queries, keys)
    if mask_flag:
        S = keys.shape[1]
        mask = jnp.triu(jnp.ones((L, S), dtype=bool), k=1)
        scores = jnp.where(mask[None, None], -jnp.inf, scores)
    a = jax.nn.softmax(scale * scores, axis=-1)
    return jnp.einsum('bhls,bshd->blhd', a, values)


if __name__ == "__main__":
    B, L, H, E = 2, 8, 4, 32
    S, D = L, E   # self-attention: S == L, D == E

    key = jax.random.PRNGKey(0)
    kq, kk, kv = jax.random.split(key, 3)
    queries = jax.random.normal(kq, (B, L, H, E), dtype=jnp.float32)
    keys    = jax.random.normal(kk, (B, S, H, E), dtype=jnp.float32)
    values  = jax.random.normal(kv, (B, S, H, D), dtype=jnp.float32)

    out, attn = full_attention(queries, keys, values)
    out = jax.block_until_ready(out)

    ref = _reference(queries, keys, values)
    assert out.shape == (B, L, H, D)
    assert attn is None
    assert jnp.allclose(out, ref, atol=1e-4, rtol=1e-4), "mismatch vs reference"
    print("KERNEL_OK")
</pallas_src>

<mosaic_0001>
module attributes {stable_mosaic.version = 11 : i64} {
  func.func @_attn_kernel(%arg0: i32, %arg1: memref<1x8x128xf32, #tpu.memory_space<vmem>>, %arg2: memref<1x8x128xf32, #tpu.memory_space<vmem>>, %arg3: memref<1x8x128xf32, #tpu.memory_space<vmem>>, %arg4: memref<1x8x128xf32, #tpu.memory_space<vmem>>) attributes {dimension_semantics = [#tpu.dimension_semantics<parallel>], iteration_bounds = array<i64: 2>, scalar_prefetch = 0 : i64, scratch_operands = 0 : i64, tpu.core_type = #tpu.core_type<tc>, window_params = [{transform_indices = @transform_0, window_bounds = array<i64: 1, 8, 128>}, {transform_indices = @transform_1, window_bounds = array<i64: 1, 8, 128>}, {transform_indices = @transform_2, window_bounds = array<i64: 1, 8, 128>}, {transform_indices = @transform_3, window_bounds = array<i64: 1, 8, 128>}]} {
    %c0 = arith.constant 0 : index
    %c0_0 = arith.constant 0 : index
    %c0_1 = arith.constant 0 : index
    %0 = vector.load %arg1[%c0, %c0_0, %c0_1] : memref<1x8x128xf32, #tpu.memory_space<vmem>>, vector<1x8x128xf32>
    %1 = vector.shape_cast %0 : vector<1x8x128xf32> to vector<8x128xf32>
    %cst = arith.constant 0.176776692 : f32
    %2 = vector.broadcast %cst : f32 to vector<8x128xf32>
    %3 = arith.mulf %1, %2 : vector<8x128xf32>
    %c0_2 = arith.constant 0 : index
    %c0_3 = arith.constant 0 : index
    %c0_4 = arith.constant 0 : index
    %4 = vector.load %arg2[%c0_2, %c0_3, %c0_4] : memref<1x8x128xf32, #tpu.memory_space<vmem>>, vector<1x8x128xf32>
    %5 = vector.shape_cast %4 : vector<1x8x128xf32> to vector<8x128xf32>
    %c0_5 = arith.constant 0 : index
    %c0_6 = arith.constant 0 : index
    %c0_7 = arith.constant 0 : index
    %6 = vector.load %arg3[%c0_5, %c0_6, %c0_7] : memref<1x8x128xf32, #tpu.memory_space<vmem>>, vector<1x8x128xf32>
    %7 = vector.shape_cast %6 : vector<1x8x128xf32> to vector<8x128xf32>
    %8 = tpu.iota {dimensions = array<i32: 0>} : vector<8x8xi32>
    %9 = tpu.iota {dimensions = array<i32: 1>} : vector<8x8xi32>
    %10 = arith.cmpi sgt, %9, %8 : vector<8x8xi32>
    %11 = vector.extract_strided_slice %3 {offsets = [0, 0], sizes = [8, 32], strides = [1, 1]} : vector<8x128xf32> to vector<8x32xf32>
    %12 = vector.extract_strided_slice %5 {offsets = [0, 0], sizes = [8, 32], strides = [1, 1]} : vector<8x128xf32> to vector<8x32xf32>
    %13 = vector.extract_strided_slice %7 {offsets = [0, 0], sizes = [8, 32], strides = [1, 1]} : vector<8x128xf32> to vector<8x32xf32>
    %cst_8 = arith.constant dense<0.000000e+00> : vector<8x8xf32>
    %14 = tpu.matmul %11, %12, %cst_8 {dimension_numbers = #tpu.dot_dimension_numbers<[1], [1], [0], [0], [0, 0, 1, 0], [], []>} : vector<8x32xf32>, vector<8x32xf32>, vector<8x8xf32> -> vector<8x8xf32>
    %cst_9 = arith.constant 0xFF800000 : f32
    %15 = vector.broadcast %cst_9 : f32 to vector<8x8xf32>
    %16 = arith.select %10, %15, %14 : vector<8x8xi1>, vector<8x8xf32>
    %cst_10 = arith.constant dense<0xFF800000> : vector<8xf32>
    %17 = vector.multi_reduction <maximumf>, %16, %cst_10 [1] : vector<8x8xf32> to vector<8xf32>
    %18 = vector.shape_cast %17 : vector<8xf32> to vector<8x1xf32>
    %19 = vector.broadcast %18 : vector<8x1xf32> to vector<8x8xf32>
    %20 = arith.subf %16, %19 : vector<8x8xf32>
    %21 = math.exp %20 : vector<8x8xf32>
    %cst_11 = arith.constant dense<0.000000e+00> : vector<8xf32>
    %22 = vector.multi_reduction <add>, %21, %cst_11 [1] : vector<8x8xf32> to vector<8xf32>
    %23 = vector.shape_cast %22 : vector<8xf32> to vector<8x1xf32>
    %cst_12 = arith.constant dense<0.000000e+00> : vector<8x32xf32>
    %24 = tpu.matmul %21, %13, %cst_12 {dimension_numbers = #tpu.dot_dimension_numbers<[1], [0], [0], [1], [0, 0, 1, 1], [], []>} : vector<8x8xf32>, vector<8x32xf32>, vector<8x32xf32> -> vector<8x32xf32>
    %25 = tpu.reciprocal %23 : vector<8x1xf32> -> vector<8x1xf32>
    %26 = vector.broadcast %25 : vector<8x1xf32> to vector<8x32xf32>
    %27 = arith.mulf %24, %26 : vector<8x32xf32>
    %28 = vector.extract_strided_slice %3 {offsets = [0, 32], sizes = [8, 32], strides = [1, 1]} : vector<8x128xf32> to vector<8x32xf32>
    %29 = vector.extract_strided_slice %5 {offsets = [0, 32], sizes = [8, 32], strides = [1, 1]} : vector<8x128xf32> to vector<8x32xf32>
    %30 = vector.extract_strided_slice %7 {offsets = [0, 32], sizes = [8, 32], strides = [1, 1]} : vector<8x128xf32> to vector<8x32xf32>
    %cst_13 = arith.constant dense<0.000000e+00> : vector<8x8xf32>
    %31 = tpu.matmul %28, %29, %cst_13 {dimension_numbers = #tpu.dot_dimension_numbers<[1], [1], [0], [0], [0, 0, 1, 0], [], []>} : vector<8x32xf32>, vector<8x32xf32>, vector<8x8xf32> -> vector<8x8xf32>
    %cst_14 = arith.constant 0xFF800000 : f32
    %32 = vector.broadcast %cst_14 : f32 to vector<8x8xf32>
    %33 = arith.select %10, %32, %31 : vector<8x8xi1>, vector<8x8xf32>
    %cst_15 = arith.constant dense<0xFF800000> : vector<8xf32>
    %34 = vector.multi_reduction <maximumf>, %33, %cst_15 [1] : vector<8x8xf32> to vector<8xf32>
    %35 = vector.shape_cast %34 : vector<8xf32> to vector<8x1xf32>
    %36 = vector.broadcast %35 : vector<8x1xf32> to vector<8x8xf32>
    %37 = arith.subf %33, %36 : vector<8x8xf32>
    %38 = math.exp %37 : vector<8x8xf32>
    %cst_16 = arith.constant dense<0.000000e+00> : vector<8xf32>
    %39 = vector.multi_reduction <add>, %38, %cst_16 [1] : vector<8x8xf32> to vector<8xf32>
    %40 = vector.shape_cast %39 : vector<8xf32> to vector<8x1xf32>
    %cst_17 = arith.constant dense<0.000000e+00> : vector<8x32xf32>
    %41 = tpu.matmul %38, %30, %cst_17 {dimension_numbers = #tpu.dot_dimension_numbers<[1], [0], [0], [1], [0, 0, 1, 1], [], []>} : vector<8x8xf32>, vector<8x32xf32>, vector<8x32xf32> -> vector<8x32xf32>
    %42 = tpu.reciprocal %40 : vector<8x1xf32> -> vector<8x1xf32>
    %43 = vector.broadcast %42 : vector<8x1xf32> to vector<8x32xf32>
    %44 = arith.mulf %41, %43 : vector<8x32xf32>
    %45 = vector.extract_strided_slice %3 {offsets = [0, 64], sizes = [8, 32], strides = [1, 1]} : vector<8x128xf32> to vector<8x32xf32>
    %46 = vector.extract_strided_slice %5 {offsets = [0, 64], sizes = [8, 32], strides = [1, 1]} : vector<8x128xf32> to vector<8x32xf32>
    %47 = vector.extract_strided_slice %7 {offsets = [0, 64], sizes = [8, 32], strides = [1, 1]} : vector<8x128xf32> to vector<8x32xf32>
    %cst_18 = arith.constant dense<0.000000e+00> : vector<8x8xf32>
    %48 = tpu.matmul %45, %46, %cst_18 {dimension_numbers = #tpu.dot_dimension_numbers<[1], [1], [0], [0], [0, 0, 1, 0], [], []>} : vector<8x32xf32>, vector<8x32xf32>, vector<8x8xf32> -> vector<8x8xf32>
    %cst_19 = arith.constant 0xFF800000 : f32
    %49 = vector.broadcast %cst_19 : f32 to vector<8x8xf32>
    %50 = arith.select %10, %49, %48 : vector<8x8xi1>, vector<8x8xf32>
    %cst_20 = arith.constant dense<0xFF800000> : vector<8xf32>
    %51 = vector.multi_reduction <maximumf>, %50, %cst_20 [1] : vector<8x8xf32> to vector<8xf32>
    %52 = vector.shape_cast %51 : vector<8xf32> to vector<8x1xf32>
    %53 = vector.broadcast %52 : vector<8x1xf32> to vector<8x8xf32>
    %54 = arith.subf %50, %53 : vector<8x8xf32>
    %55 = math.exp %54 : vector<8x8xf32>
    %cst_21 = arith.constant dense<0.000000e+00> : vector<8xf32>
    %56 = vector.multi_reduction <add>, %55, %cst_21 [1] : vector<8x8xf32> to vector<8xf32>
    %57 = vector.shape_cast %56 : vector<8xf32> to vector<8x1xf32>
    %cst_22 = arith.constant dense<0.000000e+00> : vector<8x32xf32>
    %58 = tpu.matmul %55, %47, %cst_22 {dimension_numbers = #tpu.dot_dimension_numbers<[1], [0], [0], [1], [0, 0, 1, 1], [], []>} : vector<8x8xf32>, vector<8x32xf32>, vector<8x32xf32> -> vector<8x32xf32>
    %59 = tpu.reciprocal %57 : vector<8x1xf32> -> vector<8x1xf32>
    %60 = vector.broadcast %59 : vector<8x1xf32> to vector<8x32xf32>
    %61 = arith.mulf %58, %60 : vector<8x32xf32>
    %62 = vector.extract_strided_slice %3 {offsets = [0, 96], sizes = [8, 32], strides = [1, 1]} : vector<8x128xf32> to vector<8x32xf32>
    %63 = vector.extract_strided_slice %5 {offsets = [0, 96], sizes = [8, 32], strides = [1, 1]} : vector<8x128xf32> to vector<8x32xf32>
    %64 = vector.extract_strided_slice %7 {offsets = [0, 96], sizes = [8, 32], strides = [1, 1]} : vector<8x128xf32> to vector<8x32xf32>
    %cst_23 = arith.constant dense<0.000000e+00> : vector<8x8xf32>
    %65 = tpu.matmul %62, %63, %cst_23 {dimension_numbers = #tpu.dot_dimension_numbers<[1], [1], [0], [0], [0, 0, 1, 0], [], []>} : vector<8x32xf32>, vector<8x32xf32>, vector<8x8xf32> -> vector<8x8xf32>
    %cst_24 = arith.constant 0xFF800000 : f32
    %66 = vector.broadcast %cst_24 : f32 to vector<8x8xf32>
    %67 = arith.select %10, %66, %65 : vector<8x8xi1>, vector<8x8xf32>
    %cst_25 = arith.constant dense<0xFF800000> : vector<8xf32>
    %68 = vector.multi_reduction <maximumf>, %67, %cst_25 [1] : vector<8x8xf32> to vector<8xf32>
    %69 = vector.shape_cast %68 : vector<8xf32> to vector<8x1xf32>
    %70 = vector.broadcast %69 : vector<8x1xf32> to vector<8x8xf32>
    %71 = arith.subf %67, %70 : vector<8x8xf32>
    %72 = math.exp %71 : vector<8x8xf32>
    %cst_26 = arith.constant dense<0.000000e+00> : vector<8xf32>
    %73 = vector.multi_reduction <add>, %72, %cst_26 [1] : vector<8x8xf32> to vector<8xf32>
    %74 = vector.shape_cast %73 : vector<8xf32> to vector<8x1xf32>
    %cst_27 = arith.constant dense<0.000000e+00> : vector<8x32xf32>
    %75 = tpu.matmul %72, %64, %cst_27 {dimension_numbers = #tpu.dot_dimension_numbers<[1], [0], [0], [1], [0, 0, 1, 1], [], []>} : vector<8x8xf32>, vector<8x32xf32>, vector<8x32xf32> -> vector<8x32xf32>
    %76 = tpu.reciprocal %74 : vector<8x1xf32> -> vector<8x1xf32>
    %77 = vector.broadcast %76 : vector<8x1xf32> to vector<8x32xf32>
    %78 = arith.mulf %75, %77 : vector<8x32xf32>
    %79 = tpu.concatenate %27, %44, %61, %78 in 1 : vector<8x32xf32>, vector<8x32xf32>, vector<8x32xf32>, vector<8x32xf32> -> vector<8x128xf32>
    %c0_28 = arith.constant 0 : index
    %c0_29 = arith.constant 0 : index
    %c0_30 = arith.constant 0 : index
    %80 = vector.load %arg4[%c0_28, %c0_29, %c0_30] : memref<1x8x128xf32, #tpu.memory_space<vmem>>, vector<1x8x128xf32>
    %81 = vector.shape_cast %80 : vector<1x8x128xf32> to vector<8x128xf32>
    %82 = vector.shape_cast %79 : vector<8x128xf32> to vector<1x8x128xf32>
    tpu.vector_store %arg4[%c0_28, %c0_29, %c0_30], %82 {strides = array<i32>} : memref<1x8x128xf32, #tpu.memory_space<vmem>>, vector<1x8x128xf32>,
    return
  }
  func.func @transform_0(%arg0: i32) -> (i32, i32, i32) {
    %c0_i32 = arith.constant 0 : i32
    %c0_i32_0 = arith.constant 0 : i32
    %c0_i32_1 = arith.constant 0 : i32
    return %arg0, %c0_i32, %c0_i32_0 : i32, i32, i32
  }
  func.func @transform_1(%arg0: i32) -> (i32, i32, i32) {
    %c0_i32 = arith.constant 0 : i32
    %c0_i32_0 = arith.constant 0 : i32
    %c0_i32_1 = arith.constant 0 : i32
    return %arg0, %c0_i32, %c0_i32_0 : i32, i32, i32
  }
  func.func @transform_2(%arg0: i32) -> (i32, i32, i32) {
    %c0_i32 = arith.constant 0 : i32
    %c0_i32_0 = arith.constant 0 : i32
    %c0_i32_1 = arith.constant 0 : i32
    return %arg0, %c0_i32, %c0_i32_0 : i32, i32, i32
  }
  func.func @transform_3(%arg0: i32) -> (i32, i32, i32) {
    %c0_i32 = arith.constant 0 : i32
    %c0_i32_0 = arith.constant 0 : i32
    %c0_i32_1 = arith.constant 0 : i32
    return %arg0, %c0_i32, %c0_i32_0 : i32, i32, i32
  }
}

</mosaic_0001>

<bundles_post_ra>
// kernel: tpu_custom_call.1
= control target key start
LH: loop header
LB: loop body
LE: loop exit
PB: predicated region body
PF: predicated region fallthrough
CT: control target
= control target key end

     0   :  { %s1700_s0 = inlined_call_operand.hbm [shape: f32[2,8,128], index: 0, kind: input, shape index: {}]   ;;  %s1701_s1 = inlined_call_operand.hbm [shape: f32[2,8,128], index: 1, kind: input, shape index: {}]   ;;  %s1702_s2 = inlined_call_operand.hbm [shape: f32[2,8,128], index: 2, kind: input, shape index: {}]   ;;  %s1703_s3 = inlined_call_operand.hbm [shape: f32[2,8,128], index: 3, kind: output, shape index: {}]  }
   0x1   :  { %1707 = sst [smem:[#allocation13_spill]] %s1700_s0 }
   0x2   :  { %1708 = sst [smem:[#allocation14_spill]] %s1701_s1 }
   0x3   :  { %8 = vsyncpa [#allocation3], 0 }
   0x4   :  { %10 = vsyncpa [#allocation3 + $0x1], 0 }
   0x5   :  { %11 = vsyncpa [#allocation6], 0 }
   0x6   :  { %13 = vsyncpa [#allocation6 + $0x1], 0 }
   0x7   :  { %14 = vsyncpa [#allocation4], 0 }
   0x8   :  { %16 = vsyncpa [#allocation4 + $0x1], 0  ;;  %s1419_s12 = smov 0   ;;  %s1421_s13 = smov 0  }
   0x9   :  { %s1423_s14 = smov 0   ;;  %s1425_s15 = smov 0  }
   0xa LB: > { %s1440_s16 = sadd.s32 4294967295, %s1388_s15   ;;  %s1073_s17 = sadd.s32 4294967294, %s1388_s15   ;;  %s1388_s15 = sphi %s1425_s15, %s1729_s15   ;;  %s1384_s14 = sphi %s1423_s14, %s1728_s14   ;;  %s1380_s13 = sphi %s1421_s13, %s1727_s13   ;;  %s1376_s12 = sphi %s1419_s12, %s1726_s12  }
   0xb   : > { %s1444_s18 = sadd.s32 1, %s1388_s15   ;;  %s29_s19 = sadd.s32 1, %s1384_s14 }
   0xc   : > { %s26_s20 = ssub.s32 %s1388_s15, %s1444_s18  ;;  %p36_p0 = scmp.ne.s32.totalorder %s1384_s14, %s1380_s13 }
   0xd   : > { %p27_p1 = scmp.eq.s32.totalorder %s26_s20, 0  ;;  %p37_p2 = scmp.eq.s32.totalorder %s1388_s15, 0 }
   0xe   : > { %p42_p3 = scmp.ne.s32.totalorder %s1380_s13, %s1376_s12  ;;  %p43_p4 = scmp.eq.s32.totalorder %s1440_s16, 0 }
   0xf   : > { %s1456_s21 = scalar_select %p27_p1, %s1384_s14, %s29_s19  }
  0x10   : > { %p38_p5 = por %p37_p2, %p36_p0  ;;  %p1458_p6 = por %p43_p4, %p42_p3 }
  0x11   : > { %1709 = sst [smem:[#allocation12_spill]] %s1456_s21  ;;  %p118_p7 = scmp.eq.s32.totalorder %s1440_s16, 1 }
  0x12   : > { %s1710_s22 = scalar_select %p1458_p6, 1, 0 }
  0x13   : > { %p124_p8 = scmp.eq.s32.totalorder %s1073_s17, 1  ;;  %p1181_p10 = scmp.lt.s32.totalorder %s1388_s15, 2 }
  0x14   : > { %p1465_p11 = por %p118_p7, %p36_p0  ;;  %s1704_s25 = sand.u32 1, %s1384_s14  }
  0x15   : > { %p1469_p12 = por %p124_p8, %p42_p3  ;;  %s1475_s26 = sshll.u32 %s1388_s15, 7 }
  0x16   : > { %s1711_s23 = scalar_select %p1465_p11, 1, 0 }
  0x17   : > { %s1712_s24 = scalar_select %p1469_p12, 1, 0 }
  0x18   : > { %s1479_s27 = sshll.u32 %s1704_s25, 3  ;;  %p1481_p13 = pnand %p1181_p10, %p38_p5 }
  0x19   : > { %s162_s29 = sand.u32 1, %s1388_s15   ;;  %s1714_s1 = sld [smem:[#allocation14_spill]] }
  0x1a   : > { %s166_s6 = scalar_lea.vmem [#allocation5], %s1479_s27  ;;  %s1494_s8 = scalar_lea.sflag [#allocation6], %s162_s29 }
  0x1b   : > { %s173_s7 = sshll.u32 %s166_s6, 4  ;;  %p1500_p2 = pneg %p1481_p13  ;;  %s174_s7 = int_to_ptr.vmem [resolvable:$true] %s173_s7 }
  0x1f   : > { %s1490_s5 = scalar_lea.hbm %s1714_s1, %s1475_s26  ;;  %s1241_s19 = scalar_lea.hbm %s1714_s1, 256 }
  0x20   : > { %s1236_s9 = scalar_lea.hbm %s1490_s5, 128  ;;  %p1242_p5 = scmp.lt.s32.totalorder %s1490_s5, %s1714_s1 }
  0x21   : > { %p1237_p1 = scmp.ne.s32.totalorder %s1490_s5, %s1236_s9  ;;  %p1243_p7 = scmp.lt.s32.totalorder %s1241_s19, %s1236_s9 }
  0x23   : > { %p1239_p3 = pnand %p1500_p2, %p1237_p1  ;;  %p1244_p8 = por %p1243_p7, %p1242_p5 }
  0x25   : > { %p1240_p4 = pneg %p1239_p3 }
  0x27   : > { %p1245_p10 = pnand %p1244_p8, %p1240_p4 }
  0x29   : > { %1248 = shalt.err (!%p1245_p10)
}
  0x2a   : > { %s1249_s29 = scalar_lea.vmem %s174_s7, 128  ;;  %s1390_s4 = smov [#allocation5]  }
  0x2b   : > { %p1250_p9 = scmp.ne.s32.totalorder %s174_s7, %s1249_s29  ;;  %s1254_s6 = sshll.u32 %s1390_s4, 4  ;;  %s1255_s6 = int_to_ptr.vmem [resolvable:$false] %s1254_s6 }
  0x2c   : > { %s1256_s25 = scalar_lea.vmem %s1255_s6, 256  ;;  %p1257_p1 = scmp.lt.s32.totalorder %s174_s7, %s1255_s6 }
  0x2d   : > { %p1252_p0 = pnand %p1250_p9, %p1500_p2  ;;  %p1258_p3 = scmp.lt.s32.totalorder %s1256_s25, %s1249_s29 }
  0x2f   : > { %p1253_p12 = pneg %p1252_p0  ;;  %p1259_p11 = por %p1258_p3, %p1257_p1 }
  0x31   : > { %p1260_p6 = pnand %p1259_p11, %p1253_p12 }
  0x33   : > { %1263 = shalt.err (!%p1260_p6)
}
  0x34   : > { %1173 = dma.hbm_to_vmem [thread:$0]  (!%p1481_p13), %s1490_s5, 128, %s174_s7, %s1494_s8  }
  0x35   : > { %p196_p9 = scmp.lt.s32.totalorder %s1388_s15, 3  ;;  %s1716_s0 = sld [smem:[#allocation13_spill]] }
  0x36   : > { %p1717_p0 = scmp.ge.s32.totalorder %s1388_s15, 1  ;;  %s148_s19 = scalar_lea.vmem [#allocation2], %s1479_s27 }
  0x37   : > { %s155_s20 = sshll.u32 %s148_s19, 4  ;;  %s1719_s30 = sand.u32 1, %s1384_s14   ;;  %s156_s20 = int_to_ptr.vmem [resolvable:$true] %s155_s20 }
  0x38   : > { %p1528_p6 = pnand %p1717_p0, %p196_p9  ;;  %s145_s29 = scalar_lea.sflag [#allocation3], %s1719_s30 }
  0x3a   : > { %s1718_s25 = scalar_select %p1528_p6, 1, 0 }
  0x3b   : > { %s1524_s17 = scalar_lea.hbm %s1716_s0, %s1475_s26  ;;  %s1269_s6 = scalar_lea.hbm %s1716_s0, 256 }
  0x3c   : > { %s1264_s5 = scalar_lea.hbm %s1524_s17, 128  ;;  %p1270_p5 = scmp.lt.s32.totalorder %s1524_s17, %s1716_s0 }
  0x3d   : > { %p1265_p11 = scmp.ne.s32.totalorder %s1524_s17, %s1264_s5  ;;  %p1271_p7 = scmp.lt.s32.totalorder %s1269_s6, %s1264_s5 }
  0x3f   : > { %p1267_p12 = pnand %p1265_p11, %p1500_p2  ;;  %p1272_p8 = por %p1271_p7, %p1270_p5 }
  0x41   : > { %p1268_p4 = pneg %p1267_p12 }
  0x43   : > { %p1273_p10 = pnand %p1272_p8, %p1268_p4 }
  0x45   : > { %1276 = shalt.err (!%p1273_p10)
}
  0x46   : > { %s1277_s19 = scalar_lea.vmem %s156_s20, 128  ;;  %s1391_s30 = smov [#allocation2]  }
  0x47   : > { %p1278_p1 = scmp.ne.s32.totalorder %s156_s20, %s1277_s19  ;;  %s1282_s1 = sshll.u32 %s1391_s30, 4  ;;  %s1283_s1 = int_to_ptr.vmem [resolvable:$false] %s1282_s1 }
  0x48   : > { %s1284_s21 = scalar_lea.vmem %s1283_s1, 256  ;;  %p1285_p0 = scmp.lt.s32.totalorder %s156_s20, %s1283_s1 }
  0x49   : > { %p1280_p3 = pnand %p1278_p1, %p1500_p2  ;;  %p1286_p11 = scmp.lt.s32.totalorder %s1284_s21, %s1277_s19 }
  0x4b   : > { %p1281_p9 = pneg %p1280_p3  ;;  %p1287_p12 = por %p1286_p11, %p1285_p0 }
  0x4d   : > { %p1288_p6 = pnand %p1287_p12, %p1281_p9 }
  0x4f   : > { %1291 = shalt.err (!%p1288_p6)
}
  0x50   : > { %1170 = dma.hbm_to_vmem [thread:$0]  (!%p1481_p13), %s1524_s17, 128, %s156_s20, %s145_s29  }
  0x51   : > { %s189_s4 = scalar_lea.hbm %s1702_s2, %s1475_s26  ;;  %s184_s6 = scalar_lea.vmem [#allocation7], %s1479_s27 }
  0x52   : > { %s191_s9 = sshll.u32 %s184_s6, 4  ;;  %s1292_s11 = scalar_lea.hbm %s189_s4, 128  ;;  %s192_s9 = int_to_ptr.vmem [resolvable:$true] %s191_s9 }
  0x53   : > { %p1293_p4 = scmp.ne.s32.totalorder %s189_s4, %s1292_s11  ;;  %s1297_s19 = scalar_lea.hbm %s1702_s2, 256 }
  0x54   : > { %p1298_p6 = scmp.lt.s32.totalorder %s189_s4, %s1702_s2  ;;  %p1299_p8 = scmp.lt.s32.totalorder %s1297_s19, %s1292_s11 }
  0x55   : > { %p1295_p5 = pnand %p1293_p4, %p1500_p2 }
  0x56   : > { %p1300_p10 = por %p1299_p8, %p1298_p6 }
  0x57   : > { %p1296_p7 = pneg %p1295_p5 }
  0x59   : > { %p1301_p1 = pnand %p1300_p10, %p1296_p7 }
  0x5b   : > { %1304 = shalt.err (!%p1301_p1)
}
  0x5c   : > { %s1305_s26 = scalar_lea.vmem %s192_s9, 128  ;;  %s1392_s27 = smov [#allocation7]  }
  0x5d   : > { %p1306_p3 = scmp.ne.s32.totalorder %s192_s9, %s1305_s26  ;;  %s1310_s17 = sshll.u32 %s1392_s27, 4  ;;  %s1311_s17 = int_to_ptr.vmem [resolvable:$false] %s1310_s17 }
  0x5e   : > { %s1312_s20 = scalar_lea.vmem %s1311_s17, 256  ;;  %p1313_p11 = scmp.lt.s32.totalorder %s192_s9, %s1311_s17 }
  0x5f   : > { %p1308_p9 = pnand %p1306_p3, %p1500_p2  ;;  %p1314_p12 = scmp.lt.s32.totalorder %s1312_s20, %s1305_s26 }
  0x61   : > { %p1309_p0 = pneg %p1308_p9  ;;  %p1315_p4 = por %p1314_p12, %p1313_p11 }
  0x63   : > { %p1316_p5 = pnand %p1315_p4, %p1309_p0 }
  0x65   : > { %1319 = shalt.err (!%p1316_p5)
}
  0x66   : > { %1176 = dma.hbm_to_vmem [thread:$0]  (!%p1481_p13), %s189_s4, 128, %s192_s9, %s1494_s8  }
  0x67   : > { %p1720_p7 = scmp.ne.s32.totalorder %s1718_s25, 0 }
  0x68   : > { %s1572_s0 = sand.u32 (!%p1720_p7), 1, %s1380_s13   ;;  %p1721_p2 = scmp.ne.s32.totalorder (!%p1720_p7), %s1710_s22, 0 }
  0x69   : > { %200 = sbr.rel (%p1720_p7) target bundleno = 1203 (0x4b3), region = 32  ;;  %s1575_s10 = sshll.u32 (!%p1720_p7), %s1572_s0, 3 }
  0x6a   : > { %s203_s29 = scalar_lea.sflag (!%p1720_p7), [#allocation3], %s1572_s0  ;;  %s206_s5 = scalar_lea.vmem (!%p1720_p7), [#allocation2], %s1575_s10 }
  0x6e   : > { %1363 = dma.done.wait (%p1721_p2), %s203_s29, 128  }
  0x6f   : > { %1365 = vsyncadd (%p1721_p2), %s203_s29, 4294967168  ;;  %s211_s28 = sand.u32 1, %s1440_s16   ;;  %s215_s25 = scalar_lea.vmem [#allocation5], %s1575_s10 }
  0x70   : > { %s212_s8 = scalar_lea.sflag [#allocation6], %s211_s28 }
  0x71   : > { %1367 = dma.done.wait (%p1721_p2), %s212_s8, 256  }
  0x72   : > { %1369 = vsyncadd (%p1721_p2), %s212_s8, 4294967040  ;;  %v1393_v0 = vmov 0.0   ;;  %vm1394_vm0 = vmmov 0   ;;  %vm266_vm1 = vcmask 261120   ;;  %v259_v1 = vld [vmem:[%s215_s25] sm:$0xff]  ;;  %v257_v2 = vld [vmem:[%s206_s5] sm:$0xff]  ;;  %v261_v4 = vlaneseq }
  0x73   : > { %1119 = vmatprep.subr.mxu0 %v1393_v0  ;;  %1121 = vmatprep.mubr.msk.f32.mxu0 %vm1394_vm0, %v1393_v0  ;;  %v258_v3 = vmul.f32 0.17677669, %v257_v2  ;;  %s1395_s22 = smov 96   ;;  %s1396_s7 = smov 64   ;;  %vm344_vm3 = vcmask 64512   ;;  %vm941_vm4 = vcmask 523264  }
  0x74   : > { %1124 = vmatprep.subr.mxu1 %v1393_v0  ;;  %1126 = vmatprep.mubr.msk.f32.mxu1 %vm1394_vm0, %v1393_v0  ;;  %s1397_s4 = smov 32   ;;  %v262_v5 = vshrl.u32 %v261_v4, 7  ;;  %v264_v6 = vand.u32 127, %v261_v4  ;;  %s224_s6 = scalar_lea.vmem [#allocation7], %s1575_s10  ;;  %vm943_vm5 = vcmask 785408  }
  0x75   : > { %1120 = vmatpush3.xpose.msk.msra.mxu0 %vm266_vm1, %v259_v1  ;;  %429 = vrot.lane.b32.xlu1 %v258_v3, %s1395_s22  ;;  %v260_v11 = vld [vmem:[%s224_s6] sm:$0xff]  ;;  %s1100_s9 = sshll.u32 %s1440_s16, 7  ;;  %s256_s11 = scalar_lea.vmem [#allocation8], %s1575_s10 }
  0x76   : > { %1134 = vmatprep.subr.mxu0 %v1393_v0  ;;  %vm265_vm2 = vcmp.gt.s32.totalorder %v264_v6, %v262_v5  ;;  %1125 = vmatpush3.msra.mxu1 %v260_v11  ;;  %s960_s1 = sshll.u32 %s256_s11, 4  ;;  %s1663_s30 = scalar_lea.hbm %s1703_s3, %s1100_s9  ;;  %s961_s1 = int_to_ptr.vmem [resolvable:$true] %s960_s1 }
  0x77   : > { %1129 = vmatprep.subr.mxu1 %v1393_v0  ;;  %s947_s26 = scalar_lea.sflag [#allocation4], %s1572_s0  ;;  %s1320_s27 = scalar_lea.vmem %s961_s1, 128 }
  0x78   : > { %1122 = vmatmul.mubr.msk.f32.vlgmr.msra.gmra.mxu0 %vm266_vm1, %v258_v3  ;;  %p1321_p13 = scmp.ne.s32.totalorder %s961_s1, %s1320_s27  ;;  %p1722_p6 = scmp.ne.s32.totalorder %s1711_s23, 0 }
  0x79   : > { %1136 = vmatprep.mubr.msk.f32.mxu0 %vm1394_vm0, %v1393_v0  ;;  %598 = vrot.lane.b32.xlu1 %v259_v1, %s1396_s7  ;;  %s1398_s16 = smov [#allocation8]  }
  0x7a   : > { %p1322_p8 = pnand %p1321_p13, %p1722_p6  ;;  %s1324_s17 = sshll.u32 %s1398_s16, 4  ;;  %s1325_s17 = int_to_ptr.vmem [resolvable:$false] %s1324_s17 }
  0x7b   : > { %s1326_s20 = scalar_lea.vmem %s1325_s17, 256  ;;  %p1327_p1 = scmp.lt.s32.totalorder %s961_s1, %s1325_s17 }
  0x7c   : > { %p1323_p10 = pneg %p1322_p8  ;;  %p1328_p3 = scmp.lt.s32.totalorder %s1326_s20, %s1320_s27 }
  0x7d   : > { %596 = vrot.lane.b32.xlu1 %v258_v3, %s1396_s7 }
  0x7e   : > { %p1329_p9 = por %p1328_p3, %p1327_p1 }
  0x80   : > { %p1330_p0 = pnand %p1329_p9, %p1323_p10 }
  0x81   : > { %764 = vrot.lane.b32.xlu1 %v259_v1, %s1397_s4 }
  0x85   : > { %762 = vrot.lane.b32.xlu1 %v258_v3, %s1397_s4 }
  0xe7   : > { %v430_v15 = vpop.permute.xlu1 %429 }
  0xeb   : > { %v599_v16 = vpop.permute.xlu1 %598 }
  0xef   : > { %v597_v19 = vpop.permute.xlu1 %596 }
  0xf3   : > { %v765_v20 = vpop.permute.xlu1 %764 }
  0xf7   : > { %v763_v21 = vpop.permute.xlu1 %762 }
 0x138   : > { %v339_v7 = vpop.f32.mrf.mxu0 }
 0x139   : > { %v343_v8 = vsel %vm265_vm2, -inf, %v339_v7 }
 0x13a   : > { %v1123_v9 = vpop.f32.mrf.mxu0  ;;  %v345_v10 = vsel %vm344_vm3, %v343_v8, -inf }
 0x13b   : > { %346 = vmax.xlane.f32.xlu0 %v345_v10 }
 0x151   : > { %431 = vrot.lane.b32.xlu0 %v259_v1, %s1395_s22 }
 0x1c4   : > { %v347_v12 = vpop.xlane.xlu0 %346 }
 0x1c5   : > { %v348_v13 = vsub.f32 %v343_v8, %v347_v12 }
 0x1c7   : > { %v349_v14 = vmul.f32 1.442695, %v348_v13 }
 0x1c8   : > { %v432_v17 = vpop.permute.xlu0 %431 }
 0x1c9   : > { %1220 = vpow2.f32 %v349_v14 }
 0x1d6   : > { %v1610_v18 = vpop.eup %1220 }
 0x1d7   : > { %1127 = vmatmul.mubr.msk.f32.vlgmr.msra.gmra.mxu1 %vm344_vm3, %v1610_v18  ;;  %v351_v54 = vsel %vm344_vm3, %v1610_v18, 0.0 }
 0x1d8   : > { %1130 = vmatpush3.xpose.msk.msra.mxu1 %vm266_vm1, %v432_v17  ;;  %1131 = vmatprep.mubr.msk.f32.mxu1 %vm1394_vm0, %v1393_v0 }
 0x1d9   : > { %1139 = vmatprep.subr.mxu1 %v1393_v0 }
 0x1db   : > { %1132 = vmatmul.mubr.msk.f32.vlgmr.msra.gmra.mxu1 %vm266_vm1, %v430_v15 }
 0x1dc   : > { %1140 = vmatpush3.xpose.msk.msra.mxu1 %vm266_vm1, %v599_v16  ;;  %1141 = vmatprep.mubr.msk.f32.mxu1 %vm1394_vm0, %v1393_v0 }
 0x1dd   : > { %1149 = vmatprep.subr.mxu1 %v1393_v0 }
 0x1df   : > { %1142 = vmatmul.mubr.msk.f32.vlgmr.msra.gmra.mxu1 %vm266_vm1, %v597_v19 }
 0x1e0   : > { %1150 = vmatpush3.xpose.msk.msra.mxu1 %vm266_vm1, %v765_v20  ;;  %1151 = vmatprep.mubr.msk.f32.mxu1 %vm1394_vm0, %v1393_v0 }
 0x1e3   : > { %1152 = vmatmul.mubr.msk.f32.vlgmr.msra.gmra.mxu1 %vm266_vm1, %v763_v21 }
 0x297   : > { %v1628_v22 = vpop.f32.mrf.mxu1 }
 0x299   : > { %v1128_v23 = vpop.f32.mrf.mxu1 }
 0x29b   : > { %v503_v24 = vpop.f32.mrf.mxu1 }
 0x29c   : > { %v507_v25 = vsel %vm265_vm2, -inf, %v503_v24 }
 0x29d   : > { %v1133_v26 = vpop.f32.mrf.mxu1  ;;  %v508_v27 = vsel %vm344_vm3, %v507_v25, -inf }
 0x29e   : > { %509 = vmax.xlane.f32.xlu1 %v508_v27 }
 0x29f   : > { %v670_v28 = vpop.f32.mrf.mxu1 }
 0x2a0   : > { %v674_v29 = vsel %vm265_vm2, -inf, %v670_v28 }
 0x2a1   : > { %v675_v30 = vsel %vm344_vm3, %v674_v29, -inf  ;;  %v1143_v31 = vpop.f32.mrf.mxu1 }
 0x2a2   : > { %676 = vmax.xlane.f32.xlu0 %v675_v30 }
 0x2a3   : > { %v836_v32 = vpop.f32.mrf.mxu1 }
 0x2a4   : > { %v840_v34 = vsel %vm265_vm2, -inf, %v836_v32 }
 0x2a5   : > { %v1153_v33 = vpop.f32.mrf.mxu1  ;;  %v841_v35 = vsel %vm344_vm3, %v840_v34, -inf }
 0x2af   : > { %684 = vrot.lane.b32.xlu1 %v260_v11, %s1396_s7 }
 0x2b8   : > { %518 = vrot.lane.b32.xlu0 %v260_v11, %s1395_s22 }
 0x2d3   : > { %842 = vmax.xlane.f32.xlu1 %v841_v35 }
 0x2e4   : > { %850 = vrot.lane.b32.xlu1 %v260_v11, %s1397_s4 }
 0x327   : > { %v510_v36 = vpop.xlane.xlu1 %509 }
 0x328   : > { %v511_v37 = vsub.f32 %v507_v25, %v510_v36 }
 0x32a   : > { %v512_v38 = vmul.f32 1.442695, %v511_v37 }
 0x32b   : > { %v677_v39 = vpop.xlane.xlu0 %676  ;;  %v685_v44 = vpop.permute.xlu1 %684 }
 0x32c   : > { %1222 = vpow2.f32 %v512_v38  ;;  %v678_v40 = vsub.f32 %v674_v29, %v677_v39 }
 0x32e   : > { %v679_v41 = vmul.f32 1.442695, %v678_v40 }
 0x32f   : > { %v519_v42 = vpop.permute.xlu0 %518 }
 0x330   : > { %1224 = vpow2.f32 %v679_v41  ;;  %1135 = vmatpush3.msra.mxu0 %v519_v42 }
 0x331   : > { %1144 = vmatprep.subr.mxu0 %v1393_v0 }
 0x339   : > { %v1223_v43 = vpop.eup %1222 }
 0x33a   : > { %1137 = vmatmul.mubr.msk.f32.vlgmr.msra.gmra.mxu0 %vm344_vm3, %v1223_v43  ;;  %v514_v45 = vsel %vm344_vm3, %v1223_v43, 0.0 }
 0x33b   : > { %1145 = vmatpush3.msra.mxu0 %v685_v44  ;;  %515 = vadd.xlane.f32.xlu0 %v514_v45 }
 0x33c   : > { %1146 = vmatprep.mubr.msk.f32.mxu0 %vm1394_vm0, %v1393_v0  ;;  %1154 = vmatprep.subr.mxu0 %v1393_v0 }
 0x33d   : > { %v1225_v46 = vpop.eup %1224 }
 0x33e   : > { %1147 = vmatmul.mubr.msk.f32.vlgmr.msra.gmra.mxu0 %vm344_vm3, %v1225_v46  ;;  %v681_v47 = vsel %vm344_vm3, %v1225_v46, 0.0 }
 0x33f   : > { %682 = vadd.xlane.f32.xlu1 %v681_v47  ;;  %1156 = vmatprep.mubr.msk.f32.mxu0 %vm1394_vm0, %v1393_v0 }
 0x35c   : > { %v843_v48 = vpop.xlane.xlu1 %842 }
 0x35d   : > { %v844_v49 = vsub.f32 %v840_v34, %v843_v48 }
 0x35f   : > { %v845_v50 = vmul.f32 1.442695, %v844_v49 }
 0x360   : > { %v851_v51 = vpop.permute.xlu1 %850 }
 0x361   : > { %1226 = vpow2.f32 %v845_v50  ;;  %1155 = vmatpush3.msra.mxu0 %v851_v51 }
 0x36e   : > { %v1227_v52 = vpop.eup %1226 }
 0x36f   : > { %1157 = vmatmul.mubr.msk.f32.vlgmr.msra.gmra.mxu0 %vm344_vm3, %v1227_v52  ;;  %v847_v53 = vsel %vm344_vm3, %v1227_v52, 0.0 }
 0x370   : > { %848 = vadd.xlane.f32.xlu0 %v847_v53 }
 0x374   : > { %352 = vadd.xlane.f32.xlu0 %v351_v54 }
 0x3c4   : > { %v516_v55 = vpop.xlane.xlu0 %515 }
 0x3c5   : > { %1228 = vrcp.f32 %v516_v55 }
 0x3c8   : > { %v683_v56 = vpop.xlane.xlu1 %682 }
 0x3c9   : > { %1230 = vrcp.f32 %v683_v56 }
 0x3d2   : > { %v1229_v57 = vpop.eup %1228 }
 0x3d6   : > { %v1231_v61 = vpop.eup %1230 }
 0x3f9   : > { %v849_v1 = vpop.xlane.xlu0 %848 }
 0x3fa   : > { %v590_v58 = vpop.f32.mrf.mxu0  ;;  %1232 = vrcp.f32 %v849_v1 }
 0x3fb   : > { %v595_v59 = vmul.f32 %v1229_v57, %v590_v58 }
 0x3fc   : > { %v1138_v60 = vpop.f32.mrf.mxu0 }
 0x3fd   : > { %929 = vrot.lane.b32.xlu1 %v595_v59, %s1397_s4  ;;  %v353_v6 = vpop.xlane.xlu0 %352 }
 0x3fe   : > { %v756_v62 = vpop.f32.mrf.mxu0  ;;  %1234 = vrcp.f32 %v353_v6 }
 0x3ff   : > { %v761_v63 = vmul.f32 %v1231_v61, %v756_v62 }
 0x400   : > { %v1148_v0 = vpop.f32.mrf.mxu0 }
 0x401   : > { %933 = vrot.lane.b32.xlu0 %v761_v63, %s1396_s7 }
 0x407   : > { %v1233_v2 = vpop.eup %1232 }
 0x40b   : > { %v1235_v7 = vpop.eup %1234 }
 0x40c   : > { %v428_v9 = vmul.f32 %v1235_v7, %v1628_v22 }
 0x42f   : > { %v922_v3 = vpop.f32.mrf.mxu0 }
 0x430   : > { %v927_v4 = vmul.f32 %v1233_v2, %v922_v3 }
 0x431   : > { %v1158_v5 = vpop.f32.mrf.mxu0 }
 0x432   : > { %937 = vrot.lane.b32.xlu1 %v927_v4, %s1395_s22 }
 0x46f   : > { %v930_v8 = vpop.permute.xlu1 %929 }
 0x470   : > { %v940_v11 = vsel %vm266_vm1, %v428_v9, %v930_v8 }
 0x473   : > { %v934_v10 = vpop.permute.xlu0 %933 }
 0x474   : > { %v942_v12 = vsel %vm941_vm4, %v940_v11, %v934_v10 }
 0x4a4   : > { %v938_v13 = vpop.permute.xlu1 %937 }
 0x4a5   : > { %v944_v14 = vsel %vm943_vm5, %v942_v12, %v938_v13 }
 0x4a6   : > { %945 = vst [vmem:[%s256_s11] sm:$0xff] %v944_v14 }
 0x4a7   : > { %1333 = shalt.err (!%p1330_p0)
}
 0x4a8   : > { %s1334_s10 = scalar_lea.hbm %s1663_s30, 128  ;;  %s1338_s5 = scalar_lea.hbm %s1703_s3, 256 }
 0x4a9   : > { %p1335_p11 = scmp.ne.s32.totalorder %s1663_s30, %s1334_s10  ;;  %p1339_p5 = scmp.lt.s32.totalorder %s1663_s30, %s1703_s3 }
 0x4aa   : > { %p1340_p7 = scmp.lt.s32.totalorder %s1338_s5, %s1334_s10 }
 0x4ab   : > { %p1336_p12 = pnand %p1335_p11, %p1722_p6 }
 0x4ac   : > { %p1341_p2 = por %p1340_p7, %p1339_p5 }
 0x4ad   : > { %p1337_p4 = pneg %p1336_p12 }
 0x4af   : > { %p1342_p13 = pnand %p1341_p2, %p1337_p4 }
 0x4b1   : > { %1345 = shalt.err (!%p1342_p13)
}
 0x4b2   : > { %1165 = dma.vmem_to_hbm [thread:$0]  (%p1722_p6), %s961_s1, 128, %s1663_s30, %s947_s26  }
 0x4b3 PF: > { %s972_s25 = sand.u32 1, %s1376_s12   ;;  %p1723_p8 = scmp.ne.s32.totalorder %s1712_s24, 0 }
 0x4b4   : > { %p1724_p10 = scmp.ge.s32.totalorder %s1388_s15, 2  ;;  %s973_s22 = scalar_lea.sflag [#allocation4], %s972_s25 }
 0x4b6   : > { %p1178_p1 = pnand %p1724_p10, %p1723_p8 }
 0x4b8   : > { %p1179_p3 = pneg %p1178_p1 }
 0x4ba   : > { %1371 = dma.done.wait (%p1179_p3), %s973_s22, 128  }
 0x4bb   : > { %1373 = vsyncadd (%p1179_p3), %s973_s22, 4294967168  ;;  %s1725_s7 = sld [smem:[#allocation12_spill]]  ;;  %p19_p9 = scmp.ge.s32.totalorder %s1444_s18, 4  }
 0x4bc   : > { %s1726_s12 = smov %s1380_s13  ;;  %s1727_s13 = smov %s1384_s14 }
 0x4bd   : > { %s1729_s15 = smov %s1444_s18  ;;  %21 = sbr.rel (!%p19_p9) target bundleno = 10 (0xa), region = 101 }
 0x4c1   : > { %s1728_s14 = smov %s1725_s7 }
 0x4c2   :  { %978 = vsyncpa [#allocation3], 1 }
 0x4c3   :  { %980 = vsyncpa [#allocation3 + $0x1], 1 }
 0x4c4   :  { %981 = vsyncpa [#allocation6], 1 }
 0x4c5   :  { %983 = vsyncpa [#allocation6 + $0x1], 1 }
 0x4c6   :  { %984 = vsyncpa [#allocation4], 1 }
 0x4c7   :  { %986 = vsyncpa [#allocation4 + $0x1], 1 }

</bundles_post_ra>
